<compile_context>
chip_gen: v5e
topology: v5e:2x2
jax: 0.10.0
libtpu: 0.0.40
codegen_flags: <defaults>
</compile_context>

<pallas_src>
import jax
import jax.numpy as jnp
from jax.experimental import pallas as pl
from jax.experimental.pallas import tpu as pltpu

LANE = 128
SUBLANE = 8
GROUP = SUBLANE * LANE        # 1024 elems: per-tensor padding granularity (one 8-row group)
K_ACC = 8                     # independent (8,128) accumulators -> ILP on the VALU
ROW_ALIGN = SUBLANE * K_ACC   # 64 rows: tile granularity (also multiple of bf16's 16-row tile)
MAX_TILE_ROWS = 8192          # f32: 4 MiB per input per buffer (~17 MiB total VMEM)
VMEM_LIMIT_BYTES = 32 * 1024 * 1024   # explicit: v5e's 16 MiB scoped default is too small


def _round_up(x, m):
    return -(-x // m) * m


def _fm_loss_kernel(w_ref, a_ref, b_ref, out_ref, acc_ref):
    """Grid: (parallel chunk, sequential row-tile reduction).

    w_ref:   (tile_rows//8, 128) f32  per-8-row-group weight (1/numel of owning tensor)
    a_ref:   (tile_rows, 128)         initial features (native dtype)
    b_ref:   (tile_rows, 128)         predicted features (native dtype)
    out_ref: (8, 128) f32             per-chunk partial sum (written on last step)
    acc_ref: (K_ACC, 8, 128) f32      resident accumulators
    """
    j = pl.program_id(1)

    @pl.when(j == 0)
    def _():
        acc_ref[...] = jnp.zeros_like(acc_ref)

    # Upcast inside the kernel (keeps v5e's no-bf16 VALU happy; accumulation
    # is always f32 so bf16 inputs do not drift).
    a = a_ref[...].astype(jnp.float32)
    b = b_ref[...].astype(jnp.float32)
    diff = jnp.abs(a - b)                               # (tile_rows, 128), pure VPU
    tile_rows = diff.shape[0]
    g = tile_rows // SUBLANE                            # number of 8-row groups
    # Per-group weight multiply (lane-dense weight, broadcast over sublanes).
    wdiff = diff.reshape(g, SUBLANE, LANE) * w_ref[...].reshape(g, 1, LANE)
    # Fold into K_ACC independent (8,128) accumulators: pure elementwise adds,
    # no cross-lane reduce, chains are g/K_ACC deep with K_ACC-way ILP.
    acc_ref[...] += wdiff.reshape(g // K_ACC, K_ACC, SUBLANE, LANE).sum(axis=0)

    @pl.when(j == pl.num_programs(1) - 1)
    def _():
        out_ref[...] = acc_ref[...].sum(axis=0)


def _fused_weighted_abs_diff(a, b, w, *, n_par, tiles_per_chunk, tile_rows):
    """a, b: (rows, 128) native-dtype slabs; w: (rows//8, 128) f32 group weights.

    Returns (n_par, 8, 128) f32 partial sums of w * |a - b| (finished in JAX).
    """
    data_map = lambda p, j: (p * tiles_per_chunk + j, 0)

    return pl.pallas_call(
        _fm_loss_kernel,
        out_shape=jax.ShapeDtypeStruct((n_par, SUBLANE, LANE), jnp.float32),
        grid_spec=pltpu.PrefetchScalarGridSpec(
            num_scalar_prefetch=0,
            grid=(n_par, tiles_per_chunk),
            in_specs=[
                pl.BlockSpec((tile_rows // SUBLANE, LANE), data_map),  # group weights
                pl.BlockSpec((tile_rows, LANE), data_map),             # initial feats
                pl.BlockSpec((tile_rows, LANE), data_map),             # predicted feats
            ],
            out_specs=pl.BlockSpec((None, SUBLANE, LANE), lambda p, j: (p, 0, 0)),
            scratch_shapes=[pltpu.VMEM((K_ACC, SUBLANE, LANE), jnp.float32)],
        ),
        compiler_params=pltpu.CompilerParams(
            dimension_semantics=("parallel", "arbitrary"),
            vmem_limit_bytes=VMEM_LIMIT_BYTES,
        ),
    )(w, a, b)


def feature_matching_loss(initial, predicted):
    """Mirror of PyTorch FeatureMatchingLoss.forward:
       2 * sum over all feature pairs of mean(|init - pred|)."""
    pairs = []
    for disc_init, disc_pred in zip(initial, predicted):
        for init_feat, pred_feat in zip(disc_init, disc_pred):
            init_feat = jnp.asarray(init_feat)
            pred_feat = jnp.asarray(pred_feat)
            assert init_feat.shape == pred_feat.shape
            pairs.append((init_feat, pred_feat))

    # Keep the slab in the features' native dtype when possible (halves HBM
    # bytes for bf16); the kernel upcasts to f32 before any arithmetic.
    slab_dtype = jnp.result_type(*[x for pr in pairs for x in pr])
    if slab_dtype not in (jnp.dtype(jnp.float32), jnp.dtype(jnp.bfloat16)):
        slab_dtype = jnp.dtype(jnp.float32)

    a_parts, b_parts, w_parts = [], [], []
    rows = 0
    for init_feat, pred_feat in pairs:
        n = init_feat.size
        a_parts.append(jnp.ravel(init_feat).astype(slab_dtype))
        b_parts.append(jnp.ravel(pred_feat).astype(slab_dtype))
        n_pad = _round_up(n, GROUP)
        if n_pad != n:
            # Alignment pad appended as a tiny zero part (not a full-tensor pad pass).
            zpad = jnp.zeros((n_pad - n,), slab_dtype)
            a_parts.append(zpad)
            b_parts.append(zpad)
        # Lane-dense per-8-row-group weight: 1/numel of the owning tensor.
        w_parts.append(jnp.full((n_pad // GROUP, LANE), 1.0 / n, dtype=jnp.float32))
        rows += n_pad // LANE

    # Tile / chunk selection: large tiles amortize the per-grid-step overhead;
    # two parallel chunks keep both v7x TensorCores busy on large inputs
    # (harmless on single-TC v5e/v6e); small problems stay in one chunk so we
    # never pad (and read) megabytes of zeros.
    n_par = 2 if rows > MAX_TILE_ROWS else 1
    chunk_rows = -(-rows // n_par)
    tile_rows = min(MAX_TILE_ROWS, _round_up(chunk_rows, ROW_ALIGN))
    tiles_per_chunk = -(-chunk_rows // tile_rows)
    rows_needed = n_par * tiles_per_chunk * tile_rows

    extra = rows_needed - rows
    if extra > 0:
        # Slab-level alignment pad: zero data with ZERO weight -> contributes 0.
        zpad = jnp.zeros((extra * LANE,), slab_dtype)
        a_parts.append(zpad)
        b_parts.append(zpad)
        w_parts.append(jnp.zeros((extra // SUBLANE, LANE), jnp.float32))

    # The single concatenate per stream is the only wrapper-side data copy; the
    # reshape to the lane-dense (rows, 128) slab is layout-free.
    a = jnp.concatenate(a_parts).reshape(rows_needed, LANE)
    b = jnp.concatenate(b_parts).reshape(rows_needed, LANE)
    w = jnp.concatenate(w_parts, axis=0)              # (rows_needed // 8, 128)

    partial = _fused_weighted_abs_diff(
        a, b, w, n_par=n_par, tiles_per_chunk=tiles_per_chunk, tile_rows=tile_rows)
    return jnp.sum(partial) * 2.0


def _reference(initial, predicted):
    loss = jnp.float32(0.0)
    for disc_init, disc_pred in zip(initial, predicted):
        for i_f, p_f in zip(disc_init, disc_pred):
            loss = loss + jnp.mean(jnp.abs(i_f.astype(jnp.float32) -
                                           p_f.astype(jnp.float32)))
    return loss * 2.0


if __name__ == "__main__":
    key = jax.random.PRNGKey(0)

    # Two "discriminators", each producing three feature maps (NCHW).
    shapes = [
        [(2, 4, 16, 16), (2, 8, 8, 8), (2, 16, 4, 4)],
        [(2, 4, 16, 16), (2, 8, 8, 8), (2, 16, 4, 4)],
    ]

    initial, predicted = [], []
    for disc_shapes in shapes:
        d_init, d_pred = [], []
        for s in disc_shapes:
            key, k1, k2 = jax.random.split(key, 3)
            d_init.append(jax.random.normal(k1, s, dtype=jnp.float32))
            d_pred.append(jax.random.normal(k2, s, dtype=jnp.float32))
        initial.append(d_init)
        predicted.append(d_pred)

    out = jax.block_until_ready(feature_matching_loss(initial, predicted))
    ref = jax.block_until_ready(_reference(initial, predicted))
    assert jnp.allclose(out, ref, rtol=1e-5, atol=1e-5), (out, ref)
    print("KERNEL_OK")
</pallas_src>

<mosaic_0001>
module attributes {stable_mosaic.version = 11 : i64} {
  func.func @_fm_loss_kernel(%arg0: i32, %arg1: i32, %arg2: memref<8x128xf32, #tpu.memory_space<vmem>>, %arg3: memref<64x128xf32, #tpu.memory_space<vmem>>, %arg4: memref<64x128xf32, #tpu.memory_space<vmem>>, %arg5: memref<1x8x128xf32, #tpu.memory_space<vmem>>, %arg6: memref<8x8x128xf32, #tpu.memory_space<vmem>>) attributes {dimension_semantics = [#tpu.dimension_semantics<parallel>, #tpu.dimension_semantics<arbitrary>], iteration_bounds = array<i64: 1, 1>, scalar_prefetch = 0 : i64, scratch_operands = 1 : i64, tpu.core_type = #tpu.core_type<tc>, window_params = [{transform_indices = @transform_0, window_bounds = array<i64: 8, 128>}, {transform_indices = @transform_1, window_bounds = array<i64: 64, 128>}, {transform_indices = @transform_2, window_bounds = array<i64: 64, 128>}, {transform_indices = @transform_3, window_bounds = array<i64: 1, 8, 128>}]} {
    %c0_i32 = arith.constant 0 : i32
    %0 = arith.cmpi eq, %arg1, %c0_i32 : i32
    %1 = arith.extui %0 : i1 to i32
    %c0_i32_0 = arith.constant 0 : i32
    %2 = arith.cmpi ne, %1, %c0_i32_0 : i32
    scf.if %2 {
      %cst_14 = arith.constant 0.000000e+00 : f32
      %20 = vector.broadcast %cst_14 : f32 to vector<8x8x128xf32>
      %c0_15 = arith.constant 0 : index
      %c0_16 = arith.constant 0 : index
      %c0_17 = arith.constant 0 : index
      %21 = vector.load %arg6[%c0_15, %c0_16, %c0_17] : memref<8x8x128xf32, #tpu.memory_space<vmem>>, vector<8x8x128xf32>
      tpu.vector_store %arg6[%c0_15, %c0_16, %c0_17], %20 {strides = array<i32>} : memref<8x8x128xf32, #tpu.memory_space<vmem>>, vector<8x8x128xf32>,
    } else {
    }
    %c0 = arith.constant 0 : index
    %c0_1 = arith.constant 0 : index
    %3 = vector.load %arg3[%c0, %c0_1] : memref<64x128xf32, #tpu.memory_space<vmem>>, vector<64x128xf32>
    %c0_2 = arith.constant 0 : index
    %c0_3 = arith.constant 0 : index
    %4 = vector.load %arg4[%c0_2, %c0_3] : memref<64x128xf32, #tpu.memory_space<vmem>>, vector<64x128xf32>
    %5 = arith.subf %3, %4 : vector<64x128xf32>
    %6 = math.absf %5 : vector<64x128xf32>
    %7 = vector.shape_cast %6 : vector<64x128xf32> to vector<8x8x128xf32>
    %c0_4 = arith.constant 0 : index
    %c0_5 = arith.constant 0 : index
    %8 = vector.load %arg2[%c0_4, %c0_5] : memref<8x128xf32, #tpu.memory_space<vmem>>, vector<8x128xf32>
    %9 = vector.shape_cast %8 : vector<8x128xf32> to vector<8x1x128xf32>
    %10 = vector.broadcast %9 : vector<8x1x128xf32> to vector<8x8x128xf32>
    %11 = arith.mulf %7, %10 : vector<8x8x128xf32>
    %c0_6 = arith.constant 0 : index
    %c0_7 = arith.constant 0 : index
    %c0_8 = arith.constant 0 : index
    %12 = vector.load %arg6[%c0_6, %c0_7, %c0_8] : memref<8x8x128xf32, #tpu.memory_space<vmem>>, vector<8x8x128xf32>
    %13 = vector.shape_cast %11 : vector<8x8x128xf32> to vector<1x8x8x128xf32>
    %cst = arith.constant dense<0.000000e+00> : vector<8x8x128xf32>
    %14 = vector.multi_reduction <add>, %13, %cst [0] : vector<1x8x8x128xf32> to vector<8x8x128xf32>
    %15 = arith.addf %12, %14 : vector<8x8x128xf32>
    %c0_9 = arith.constant 0 : index
    %c0_10 = arith.constant 0 : index
    %c0_11 = arith.constant 0 : index
    %16 = vector.load %arg6[%c0_9, %c0_10, %c0_11] : memref<8x8x128xf32, #tpu.memory_space<vmem>>, vector<8x8x128xf32>
    tpu.vector_store %arg6[%c0_9, %c0_10, %c0_11], %15 {strides = array<i32>} : memref<8x8x128xf32, #tpu.memory_space<vmem>>, vector<8x8x128xf32>,
    %c0_i32_12 = arith.constant 0 : i32
    %17 = arith.cmpi eq, %arg1, %c0_i32_12 : i32
    %18 = arith.extui %17 : i1 to i32
    %c0_i32_13 = arith.constant 0 : i32
    %19 = arith.cmpi ne, %18, %c0_i32_13 : i32
    scf.if %19 {
      %c0_14 = arith.constant 0 : index
      %c0_15 = arith.constant 0 : index
      %c0_16 = arith.constant 0 : index
      %20 = vector.load %arg6[%c0_14, %c0_15, %c0_16] : memref<8x8x128xf32, #tpu.memory_space<vmem>>, vector<8x8x128xf32>
      %cst_17 = arith.constant dense<0.000000e+00> : vector<8x128xf32>
      %21 = vector.multi_reduction <add>, %20, %cst_17 [0] : vector<8x8x128xf32> to vector<8x128xf32>
      %c0_18 = arith.constant 0 : index
      %c0_19 = arith.constant 0 : index
      %c0_20 = arith.constant 0 : index
      %22 = vector.load %arg5[%c0_18, %c0_19, %c0_20] : memref<1x8x128xf32, #tpu.memory_space<vmem>>, vector<1x8x128xf32>
      %23 = vector.shape_cast %22 : vector<1x8x128xf32> to vector<8x128xf32>
      %24 = vector.shape_cast %21 : vector<8x128xf32> to vector<1x8x128xf32>
      tpu.vector_store %arg5[%c0_18, %c0_19, %c0_20], %24 {strides = array<i32>} : memref<1x8x128xf32, #tpu.memory_space<vmem>>, vector<1x8x128xf32>,
    } else {
    }
    return
  }
  func.func @transform_0(%arg0: i32, %arg1: i32) -> (i32, i32) {
    %c1_i32 = arith.constant 1 : i32
    %0 = arith.muli %arg0, %c1_i32 : i32
    %1 = arith.addi %0, %arg1 : i32
    %c0_i32 = arith.constant 0 : i32
    %c0_i32_0 = arith.constant 0 : i32
    return %1, %c0_i32 : i32, i32
  }
  func.func @transform_1(%arg0: i32, %arg1: i32) -> (i32, i32) {
    %c1_i32 = arith.constant 1 : i32
    %0 = arith.muli %arg0, %c1_i32 : i32
    %1 = arith.addi %0, %arg1 : i32
    %c0_i32 = arith.constant 0 : i32
    %c0_i32_0 = arith.constant 0 : i32
    return %1, %c0_i32 : i32, i32
  }
  func.func @transform_2(%arg0: i32, %arg1: i32) -> (i32, i32) {
    %c1_i32 = arith.constant 1 : i32
    %0 = arith.muli %arg0, %c1_i32 : i32
    %1 = arith.addi %0, %arg1 : i32
    %c0_i32 = arith.constant 0 : i32
    %c0_i32_0 = arith.constant 0 : i32
    return %1, %c0_i32 : i32, i32
  }
  func.func @transform_3(%arg0: i32, %arg1: i32) -> (i32, i32, i32) {
    %c0_i32 = arith.constant 0 : i32
    %c0_i32_0 = arith.constant 0 : i32
    %c0_i32_1 = arith.constant 0 : i32
    return %arg0, %c0_i32, %c0_i32_0 : i32, i32, i32
  }
}

</mosaic_0001>

<bundles_post_ra>
// kernel: tpu_custom_call.1
= control target key start
LH: loop header
LB: loop body
LE: loop exit
PB: predicated region body
PF: predicated region fallthrough
CT: control target
= control target key end

     0   :  { %8 = vsyncpa [#allocation4], 0  ;;  %s368_s0 = inlined_call_operand.hbm [shape: f32[8,128], index: 0, kind: input, shape index: {}]   ;;  %s369_s1 = inlined_call_operand.hbm [shape: f32[64,128], index: 1, kind: input, shape index: {}]   ;;  %s370_s2 = inlined_call_operand.hbm [shape: f32[64,128], index: 2, kind: input, shape index: {}]   ;;  %s371_s3 = inlined_call_operand.hbm [shape: f32[1,8,128], index: 3, kind: output, shape index: {}]  }
   0x1   :  { %9 = vsyncpa [#allocation7], 0  ;;  %s33_s14 = sshll.u32 %s369_s1, 4  ;;  %s34_s14 = int_to_ptr.hbm [resolvable:$true] %s33_s14 }
   0x2   :  { %10 = vsyncpa [#allocation5], 0  ;;  %s330_s15 = smov [#allocation6]   ;;  %s19_s19 = sshll.u32 %s368_s0, 4  ;;  %s20_s19 = int_to_ptr.hbm [resolvable:$true] %s19_s19 }
   0x3   :  { %s35_s16 = sshll.u32 %s330_s15, 4  ;;  %s331_s20 = smov 128   ;;  %s36_s16 = int_to_ptr.vmem [resolvable:$true] %s35_s16 }
   0x4   :  { %s332_s21 = smov 8   ;;  %s333_s22 = smov [#allocation3]  }
   0x5   :  { %41 = dma.hbm_to_vmem [thread:$0]  %s34_s14, 1024, %s36_s16, [#allocation7], %s331_s20, %s331_s20, %s332_s21  }
   0x6   :  { %s21_s23 = sshll.u32 %s333_s22, 4  ;;  %s50_s26 = sshll.u32 %s370_s2, 4  ;;  %s22_s23 = int_to_ptr.vmem [resolvable:$true] %s21_s23  ;;  %s51_s26 = int_to_ptr.hbm [resolvable:$true] %s50_s26 }
   0x7   :  { %24 = dma.hbm_to_vmem [thread:$0]  %s20_s19, 128, %s22_s23, [#allocation4]  }
   0x8   :  { %s334_s1 = smov [#allocation8]  }
   0x9   :  { %s52_s27 = sshll.u32 %s334_s1, 4  ;;  %s53_s27 = int_to_ptr.vmem [resolvable:$true] %s52_s27 }
   0xa   :  { %58 = dma.hbm_to_vmem [thread:$0]  %s51_s26, 1024, %s53_s27, [#allocation7], %s331_s20, %s331_s20, %s332_s21  }
   0xb   :  { %324 = dma.done.wait [#allocation4], 128  }
   0xc   :  { %325 = vsyncadd [#allocation4], 4294967168 }
   0xd   :  { %326 = dma.done.wait [#allocation7], 2048  }
   0xe   :  { %327 = vsyncadd [#allocation7], 4294965248  ;;  %v88_v0 = vld [vmem:[#allocation6] sm:$0xff]  ;;  %v89_v1 = vld [vmem:[#allocation6 + $0x8] sm:$0xff]  ;;  %s335_s0 = smov [#allocation9]   ;;  %s211_s30 = sshll.u32 %s371_s3, 4  ;;  %s212_s30 = int_to_ptr.hbm [resolvable:$true] %s211_s30 }
   0xf   :  { %v90_v2 = vld [vmem:[#allocation6 + $0x10] sm:$0xff]  ;;  %v91_v3 = vld [vmem:[#allocation6 + $0x18] sm:$0xff]  ;;  %v96_v4 = vld [vmem:[#allocation8] sm:$0xff]  ;;  %s209_s2 = sshll.u32 %s335_s0, 4  ;;  %s210_s2 = int_to_ptr.vmem [resolvable:$true] %s209_s2 }
  0x10   :  { %v97_v5 = vld [vmem:[#allocation8 + $0x8] sm:$0xff]  ;;  %v98_v6 = vld [vmem:[#allocation8 + $0x10] sm:$0xff]  ;;  %v99_v7 = vld [vmem:[#allocation8 + $0x18] sm:$0xff]  ;;  %v104_v8 = vsub.f32 %v88_v0, %v96_v4 }
  0x11   :  { %v92_v9 = vld [vmem:[#allocation6 + $0x20] sm:$0xff]  ;;  %v105_v11 = vsub.f32 %v89_v1, %v97_v5  ;;  %v106_v12 = vsub.f32 %v90_v2, %v98_v6  ;;  %v107_v13 = vsub.f32 %v91_v3, %v99_v7  ;;  %v120_v14 = vld [vmem:[#allocation3] sm:$0xff]  ;;  %v93_v15 = vld [vmem:[#allocation6 + $0x28] sm:$0xff] }
  0x12   :  { %v100_v10 = vld [vmem:[#allocation8 + $0x20] sm:$0xff]  ;;  %v101_v16 = vld [vmem:[#allocation8 + $0x28] sm:$0xff]  ;;  %v94_v17 = vld [vmem:[#allocation6 + $0x30] sm:$0xff]  ;;  %v112_v19 = vand.u32 2147483647, %v104_v8  ;;  %v122_v23 = vrot.slane %v120_v14, 1 }
  0x13   :  { %v108_v18 = vsub.f32 %v92_v9, %v100_v10  ;;  %v113_v20 = vand.u32 2147483647, %v105_v11  ;;  %v102_v21 = vld [vmem:[#allocation8 + $0x30] sm:$0xff]  ;;  %v114_v22 = vand.u32 2147483647, %v106_v12  ;;  %v123_v24 = vrot.slane %v120_v14, 2 }
  0x14   :  { %v124_v25 = vrot.slane %v120_v14, 3  ;;  %v109_v26 = vsub.f32 %v93_v15, %v101_v16  ;;  %v115_v27 = vand.u32 2147483647, %v107_v13  ;;  %v125_v28 = vrot.slane %v120_v14, 4  ;;  %v95_v30 = vld [vmem:[#allocation6 + $0x38] sm:$0xff] }
  0x15   :  { %v126_v29 = vrot.slane %v120_v14, 5  ;;  %v103_v31 = vld [vmem:[#allocation8 + $0x38] sm:$0xff]  ;;  %v129_v32 = vperm.slane %v120_v14, 0  ;;  %v130_v33 = vperm.slane %v122_v23, 0  ;;  %v131_v34 = vperm.slane %v123_v24, 0 }
  0x16   :  { %v132_v35 = vperm.slane %v124_v25, 0  ;;  %v110_v36 = vsub.f32 %v94_v17, %v102_v21  ;;  %v116_v37 = vand.u32 2147483647, %v108_v18  ;;  %v127_v38 = vrot.slane %v120_v14, 6 }
  0x17   :  { %v133_v39 = vperm.slane %v125_v28, 0  ;;  %v145_v40 = vmul.f32 %v129_v32, %v112_v19  ;;  %v146_v41 = vmul.f32 %v130_v33, %v113_v20  ;;  %v147_v42 = vmul.f32 %v131_v34, %v114_v22 }
  0x18   :  { %v111_v43 = vsub.f32 %v95_v30, %v103_v31  ;;  %v117_v44 = vand.u32 2147483647, %v109_v26  ;;  %v128_v45 = vrot.slane %v120_v14, 7  ;;  %v134_v46 = vperm.slane %v126_v29, 0 }
  0x19   :  { %v148_v47 = vmul.f32 %v132_v35, %v115_v27  ;;  %v196_v48 = vadd.f32 %v146_v41, %v145_v40  ;;  %v118_v49 = vand.u32 2147483647, %v110_v36  ;;  %v135_v50 = vperm.slane %v127_v38, 0 }
  0x1a   :  { %v149_v51 = vmul.f32 %v133_v39, %v116_v37  ;;  %v119_v53 = vand.u32 2147483647, %v111_v43  ;;  %v136_v54 = vperm.slane %v128_v45, 0  ;;  %v150_v55 = vmul.f32 %v134_v46, %v117_v44 }
  0x1b   :  { %v197_v52 = vadd.f32 %v196_v48, %v147_v42  ;;  %v151_v57 = vmul.f32 %v135_v50, %v118_v49 }
  0x1c   :  { %v152_v59 = vmul.f32 %v136_v54, %v119_v53 }
  0x1d   :  { %v198_v56 = vadd.f32 %v197_v52, %v148_v47 }
  0x1f   :  { %v199_v58 = vadd.f32 %v198_v56, %v149_v51 }
  0x21   :  { %v200_v60 = vadd.f32 %v199_v58, %v150_v55 }
  0x23   :  { %v201_v61 = vadd.f32 %v200_v60, %v151_v57 }
  0x25   :  { %v202_v62 = vadd.f32 %v201_v61, %v152_v59 }
  0x27   :  { %203 = vst [vmem:[#allocation9] sm:$0xff] %v202_v62 }
  0x28   :  { %214 = dma.vmem_to_hbm [thread:$0]  %s210_s2, 128, %s212_s30, [#allocation5]  }
  0x29   :  { %328 = dma.done.wait [#allocation5], 128  }
  0x2a   :  { %329 = vsyncadd [#allocation5], 4294967168 }
  0x2b   :  { %219 = vsyncpa [#allocation4], 1 }
  0x2c   :  { %220 = vsyncpa [#allocation7], 1 }
  0x2d   :  { %221 = vsyncpa [#allocation5], 1 }

</bundles_post_ra>
